<compile_context>
chip_gen: v5e
topology: v5e:2x2
jax: 0.10.0
libtpu: 0.0.40
codegen_flags: <defaults>
</compile_context>

<pallas_src>
import jax
import jax.numpy as jnp
from jax.experimental import pallas as pl
from jax.experimental.pallas import tpu as pltpu

LANE = 128            # lane width / padded tail + input dimension granule
SUBLANE_BF16 = 16     # bf16 sublane packing granule (batch-tile multiple)
NEG_INF = -1e30       # finite "minus infinity" for padded logits (f32 only!)


def _round_up(x, m):
    return ((x + m - 1) // m) * m


def _device_kind():
    try:
        return jax.devices()[0].device_kind.lower()
    except Exception:  # no device info available; use conservative defaults
        return ""


def _num_tensorcores():
    # v7x has 2 TensorCores per chip; v5e/v6e have 1.
    return 2 if "v7" in _device_kind() else 1


def _mxu_rows():
    # v5e MXU is 128x128; v6e/v7x are 256-row.
    kind = _device_kind()
    return 128 if ("v5 lite" in kind or "v5e" in kind) else 256


def _select_batch_tiling(batch, num_cores, max_tile):
    """One big tile per TensorCore, multiple of 16, capped at the MXU rows."""
    padded = _round_up(max(batch, 1), SUBLANE_BF16)
    per_core = _round_up(pl.cdiv(padded, num_cores), SUBLANE_BF16)
    tile = min(per_core, max_tile)
    padded = _round_up(padded, tile)
    return tile, padded


def actor_mlp_kernel(x_ref, w1_ref, b1_ref, w2_ref, b2_ref, w3_ref, b3_ref,
                     probs_ref):
    """Fused 3-layer MLP + softmax over one batch tile.

    x tile:  [TB, Din_pad]  bf16 (pre-cast / lane-padded in the wrapper)
    weights: bf16, constant index_map -> resident in VMEM across grid steps
    biases:  [1, out] f32
    output:  [TB, LANE] f32 (lane-dense; padded columns carry prob ~0)
    """
    # fc1 + ReLU  (bf16 MXU matmul, f32 accumulation)
    h1 = jnp.dot(x_ref[...], w1_ref[...], preferred_element_type=jnp.float32)
    h1 = jnp.maximum(h1 + b1_ref[...], 0.0)

    # fc2 + ReLU
    h2 = jnp.dot(h1.astype(jnp.bfloat16), w2_ref[...],
                 preferred_element_type=jnp.float32)
    h2 = jnp.maximum(h2 + b2_ref[...], 0.0)

    # fc3 (logits, lane-padded to 128; pad columns carry bias -1e30)
    logits = jnp.dot(h2.astype(jnp.bfloat16), w3_ref[...],
                     preferred_element_type=jnp.float32)
    logits = logits + b3_ref[...]

    # Numerically stable softmax over the padded last dim. exp(pad) underflows
    # to 0, so the real columns match softmax over just n_actions.
    m = jnp.max(logits, axis=-1, keepdims=True)
    e = jnp.exp(logits - m)
    denom = jnp.sum(e, axis=-1, keepdims=True)
    probs_ref[...] = (e * pl.reciprocal(denom, approx=True)).astype(
        probs_ref.dtype)


def actor_forward(state, params, n_actions, *, batch_tile=None):
    """Run the ActorNetwork forward pass; returns Categorical probs [B, n_actions]."""
    w1, b1, w2, b2, w3, b3 = params   # w*: bf16 [in,out]; b*: f32 [1,out]
    batch, input_dims = state.shape
    in_pad = w1.shape[0]              # input_dims lane-padded to mult of 128
    fc1 = w1.shape[1]
    fc2 = w2.shape[1]
    out_pad = w3.shape[1]             # == LANE

    # --- tile selection: one big tile per TensorCore -------------------------
    if batch_tile is None:
        batch_tile, padded_batch = _select_batch_tiling(
            batch, _num_tensorcores(), _mxu_rows())
    else:
        batch_tile = _round_up(batch_tile, SUBLANE_BF16)
        padded_batch = _round_up(batch, batch_tile)
    grid = (padded_batch // batch_tile,)

    # --- input prep: cast to bf16 once, lane-pad input_dims, pad batch -------
    x = state.astype(jnp.bfloat16)
    pad_rows = padded_batch - batch
    pad_cols = in_pad - input_dims
    if pad_rows or pad_cols:
        x = jnp.pad(x, ((0, pad_rows), (0, pad_cols)))

    flops = 2 * padded_batch * (in_pad * fc1 + fc1 * fc2 + fc2 * out_pad)
    bytes_accessed = (
        (w1.size + w2.size + w3.size) * 2            # bf16 weights
        + (b1.size + b2.size + b3.size) * 4          # f32 biases
        + padded_batch * in_pad * 2                  # bf16 input
        + padded_batch * out_pad * 4                 # f32 output
    )
    cost = pl.CostEstimate(
        flops=flops,
        transcendentals=padded_batch * out_pad,      # exp (+ approx recip)
        bytes_accessed=bytes_accessed,
    )

    probs_padded = pl.pallas_call(
        actor_mlp_kernel,
        out_shape=jax.ShapeDtypeStruct((padded_batch, out_pad), jnp.float32),
        grid_spec=pltpu.PrefetchScalarGridSpec(
            num_scalar_prefetch=0,
            grid=grid,
            in_specs=[
                # batch tile marches along the grid
                pl.BlockSpec((batch_tile, in_pad), lambda i: (i, 0)),
                # weights/biases: constant index_map -> no re-DMA across steps
                pl.BlockSpec(w1.shape, lambda i: (0, 0)),
                pl.BlockSpec(b1.shape, lambda i: (0, 0)),
                pl.BlockSpec(w2.shape, lambda i: (0, 0)),
                pl.BlockSpec(b2.shape, lambda i: (0, 0)),
                pl.BlockSpec(w3.shape, lambda i: (0, 0)),
                pl.BlockSpec(b3.shape, lambda i: (0, 0)),
            ],
            out_specs=pl.BlockSpec((batch_tile, out_pad), lambda i: (i, 0)),
        ),
        compiler_params=pltpu.CompilerParams(
            dimension_semantics=("parallel",)),
        cost_estimate=cost,
    )(x, w1, b1, w2, b2, w3, b3)

    return probs_padded[:batch, :n_actions]


def init_params(key, input_dims, fc1_dims, fc2_dims, n_actions):
    """PyTorch-Linear-style init (U(-1/sqrt(fan_in), 1/sqrt(fan_in))).

    Weights are returned as bf16 in [in, out] layout (transposed vs. PyTorch);
    biases as f32 [1, out].  w1 is zero-padded along its input rows to a
    multiple of 128 (matching the lane-padded input).  The last layer is
    lane-padded to LANE output columns with zero weights and -1e30 bias (kept
    f32 -- do NOT cast b3 to bf16 or the pad becomes -inf) so padded logits
    vanish under softmax.
    """
    ks = jax.random.split(key, 6)

    def lin(kw, kb, fan_in, fan_out):
        bound = 1.0 / jnp.sqrt(fan_in)
        w = jax.random.uniform(kw, (fan_in, fan_out), jnp.float32, -bound, bound)
        b = jax.random.uniform(kb, (1, fan_out), jnp.float32, -bound, bound)
        return w, b

    w1, b1 = lin(ks[0], ks[1], input_dims, fc1_dims)
    w2, b2 = lin(ks[2], ks[3], fc1_dims, fc2_dims)
    w3, b3 = lin(ks[4], ks[5], fc2_dims, n_actions)

    # Lane-pad the input side of layer 1 (zero rows: no effect on the matmul).
    in_pad = _round_up(input_dims, LANE)
    w1p = jnp.pad(w1, ((0, in_pad - input_dims), (0, 0)))

    # Lane-pad the tail layer to LANE output columns.
    pad = LANE - n_actions
    w3p = jnp.pad(w3, ((0, 0), (0, pad)))
    b3p = jnp.concatenate(
        [b3, jnp.full((1, pad), NEG_INF, jnp.float32)], axis=-1)

    return (w1p.astype(jnp.bfloat16), b1,
            w2.astype(jnp.bfloat16), b2,
            w3p.astype(jnp.bfloat16), b3p)


def reference_forward(state, params, n_actions):
    """Pure-JAX reference mirroring the kernel math (bf16 matmuls, f32 acc)."""
    w1, b1, w2, b2, w3, b3 = params
    f32 = jnp.float32
    in_pad = w1.shape[0]
    x = jnp.pad(state, ((0, 0), (0, in_pad - state.shape[1]))).astype(jnp.bfloat16)
    h1 = jnp.maximum(jnp.dot(x, w1, preferred_element_type=f32) + b1, 0.0)
    h2 = jnp.maximum(
        jnp.dot(h1.astype(jnp.bfloat16), w2, preferred_element_type=f32) + b2,
        0.0)
    logits = jnp.dot(h2.astype(jnp.bfloat16), w3,
                     preferred_element_type=f32) + b3
    return jax.nn.softmax(logits, axis=-1)[:, :n_actions]


if __name__ == "__main__":
    # Small shapes consistent with the module: state [batch, input_dims].
    batch = 64          # many states per call -> amortizes the weight DMA
    input_dims = 32
    fc1_dims = 256
    fc2_dims = 256
    n_actions = 4

    key = jax.random.PRNGKey(0)
    k_x, k_p = jax.random.split(key)

    state = jax.random.normal(k_x, (batch, input_dims), dtype=jnp.float32)
    params = init_params(k_p, input_dims, fc1_dims, fc2_dims, n_actions)

    probs = actor_forward(state, params, n_actions)
    probs = jax.block_until_ready(probs)

    ref = reference_forward(state, params, n_actions)

    assert probs.shape == (batch, n_actions)
    assert jnp.allclose(jnp.sum(probs, axis=-1), 1.0, atol=5e-3)
    assert jnp.allclose(probs, ref, atol=5e-3, rtol=5e-3)

    # TODO(synk): Categorical distribution object (sampling / log_prob) has no
    # in-kernel equivalent; the kernel returns the probability vector that
    # parameterizes it.
    print("KERNEL_OK")
</pallas_src>

<mosaic_0001>
module attributes {stable_mosaic.version = 11 : i64} {
  func.func @actor_mlp_kernel(%arg0: i32, %arg1: memref<64x128xbf16, #tpu.memory_space<vmem>>, %arg2: memref<128x256xbf16, #tpu.memory_space<vmem>>, %arg3: memref<1x256xf32, #tpu.memory_space<vmem>>, %arg4: memref<256x256xbf16, #tpu.memory_space<vmem>>, %arg5: memref<1x256xf32, #tpu.memory_space<vmem>>, %arg6: memref<256x128xbf16, #tpu.memory_space<vmem>>, %arg7: memref<1x128xf32, #tpu.memory_space<vmem>>, %arg8: memref<64x128xf32, #tpu.memory_space<vmem>>) attributes {dimension_semantics = [#tpu.dimension_semantics<parallel>], iteration_bounds = array<i64: 1>, scalar_prefetch = 0 : i64, scratch_operands = 0 : i64, tpu.core_type = #tpu.core_type<tc>, window_params = [{transform_indices = @transform_0, window_bounds = array<i64: 64, 128>}, {pipeline_mode = #tpu.pipeline_mode<synchronous>, transform_indices = @transform_1, window_bounds = array<i64: 128, 256>}, {pipeline_mode = #tpu.pipeline_mode<synchronous>, transform_indices = @transform_2, window_bounds = array<i64: 1, 256>}, {pipeline_mode = #tpu.pipeline_mode<synchronous>, transform_indices = @transform_3, window_bounds = array<i64: 256, 256>}, {pipeline_mode = #tpu.pipeline_mode<synchronous>, transform_indices = @transform_4, window_bounds = array<i64: 1, 256>}, {pipeline_mode = #tpu.pipeline_mode<synchronous>, transform_indices = @transform_5, window_bounds = array<i64: 256, 128>}, {pipeline_mode = #tpu.pipeline_mode<synchronous>, transform_indices = @transform_6, window_bounds = array<i64: 1, 128>}, {transform_indices = @transform_7, window_bounds = array<i64: 64, 128>}]} {
    %c0 = arith.constant 0 : index
    %c0_0 = arith.constant 0 : index
    %0 = vector.load %arg1[%c0, %c0_0] : memref<64x128xbf16, #tpu.memory_space<vmem>>, vector<64x128xbf16>
    %c0_1 = arith.constant 0 : index
    %c0_2 = arith.constant 0 : index
    %1 = vector.load %arg2[%c0_1, %c0_2] : memref<128x256xbf16, #tpu.memory_space<vmem>>, vector<128x256xbf16>
    %cst = arith.constant dense<0.000000e+00> : vector<64x256xf32>
    %2 = tpu.matmul %0, %1, %cst {dimension_numbers = #tpu.dot_dimension_numbers<[1], [0], [0], [1], [0, 0, 1, 1], [], []>} : vector<64x128xbf16>, vector<128x256xbf16>, vector<64x256xf32> -> vector<64x256xf32>
    %c0_3 = arith.constant 0 : index
    %c0_4 = arith.constant 0 : index
    %3 = vector.load %arg3[%c0_3, %c0_4] : memref<1x256xf32, #tpu.memory_space<vmem>>, vector<1x256xf32>
    %4 = vector.broadcast %3 : vector<1x256xf32> to vector<64x256xf32>
    %5 = arith.addf %2, %4 : vector<64x256xf32>
    %cst_5 = arith.constant 0.000000e+00 : f32
    %6 = vector.broadcast %cst_5 : f32 to vector<64x256xf32>
    %7 = arith.maximumf %5, %6 : vector<64x256xf32>
    %8 = arith.truncf %7 : vector<64x256xf32> to vector<64x256xbf16>
    %c0_6 = arith.constant 0 : index
    %c0_7 = arith.constant 0 : index
    %9 = vector.load %arg4[%c0_6, %c0_7] : memref<256x256xbf16, #tpu.memory_space<vmem>>, vector<256x256xbf16>
    %cst_8 = arith.constant dense<0.000000e+00> : vector<64x256xf32>
    %10 = tpu.matmul %8, %9, %cst_8 {dimension_numbers = #tpu.dot_dimension_numbers<[1], [0], [0], [1], [0, 0, 1, 1], [], []>} : vector<64x256xbf16>, vector<256x256xbf16>, vector<64x256xf32> -> vector<64x256xf32>
    %c0_9 = arith.constant 0 : index
    %c0_10 = arith.constant 0 : index
    %11 = vector.load %arg5[%c0_9, %c0_10] : memref<1x256xf32, #tpu.memory_space<vmem>>, vector<1x256xf32>
    %12 = vector.broadcast %11 : vector<1x256xf32> to vector<64x256xf32>
    %13 = arith.addf %10, %12 : vector<64x256xf32>
    %cst_11 = arith.constant 0.000000e+00 : f32
    %14 = vector.broadcast %cst_11 : f32 to vector<64x256xf32>
    %15 = arith.maximumf %13, %14 : vector<64x256xf32>
    %16 = arith.truncf %15 : vector<64x256xf32> to vector<64x256xbf16>
    %c0_12 = arith.constant 0 : index
    %c0_13 = arith.constant 0 : index
    %17 = vector.load %arg6[%c0_12, %c0_13] : memref<256x128xbf16, #tpu.memory_space<vmem>>, vector<256x128xbf16>
    %cst_14 = arith.constant dense<0.000000e+00> : vector<64x128xf32>
    %18 = tpu.matmul %16, %17, %cst_14 {dimension_numbers = #tpu.dot_dimension_numbers<[1], [0], [0], [1], [0, 0, 1, 1], [], []>} : vector<64x256xbf16>, vector<256x128xbf16>, vector<64x128xf32> -> vector<64x128xf32>
    %c0_15 = arith.constant 0 : index
    %c0_16 = arith.constant 0 : index
    %19 = vector.load %arg7[%c0_15, %c0_16] : memref<1x128xf32, #tpu.memory_space<vmem>>, vector<1x128xf32>
    %20 = vector.broadcast %19 : vector<1x128xf32> to vector<64x128xf32>
    %21 = arith.addf %18, %20 : vector<64x128xf32>
    %cst_17 = arith.constant dense<0xFF800000> : vector<64xf32>
    %22 = vector.multi_reduction <maximumf>, %21, %cst_17 [1] : vector<64x128xf32> to vector<64xf32>
    %23 = vector.shape_cast %22 : vector<64xf32> to vector<64x1xf32>
    %24 = vector.broadcast %23 : vector<64x1xf32> to vector<64x128xf32>
    %25 = arith.subf %21, %24 : vector<64x128xf32>
    %26 = math.exp %25 : vector<64x128xf32>
    %cst_18 = arith.constant dense<0.000000e+00> : vector<64xf32>
    %27 = vector.multi_reduction <add>, %26, %cst_18 [1] : vector<64x128xf32> to vector<64xf32>
    %28 = vector.shape_cast %27 : vector<64xf32> to vector<64x1xf32>
    %29 = tpu.reciprocal %28 {approx = true} : vector<64x1xf32> -> vector<64x1xf32>
    %30 = vector.broadcast %29 : vector<64x1xf32> to vector<64x128xf32>
    %31 = arith.mulf %26, %30 : vector<64x128xf32>
    %c0_19 = arith.constant 0 : index
    %c0_20 = arith.constant 0 : index
    %32 = vector.load %arg8[%c0_19, %c0_20] : memref<64x128xf32, #tpu.memory_space<vmem>>, vector<64x128xf32>
    tpu.vector_store %arg8[%c0_19, %c0_20], %31 {strides = array<i32>} : memref<64x128xf32, #tpu.memory_space<vmem>>, vector<64x128xf32>,
    return
  }
  func.func @transform_0(%arg0: i32) -> (i32, i32) {
    %c0_i32 = arith.constant 0 : i32
    %c0_i32_0 = arith.constant 0 : i32
    return %arg0, %c0_i32 : i32, i32
  }
  func.func @transform_1(%arg0: i32) -> (i32, i32) {
    %c0_i32 = arith.constant 0 : i32
    %c0_i32_0 = arith.constant 0 : i32
    %c0_i32_1 = arith.constant 0 : i32
    return %c0_i32, %c0_i32_0 : i32, i32
  }
  func.func @transform_2(%arg0: i32) -> (i32, i32) {
    %c0_i32 = arith.constant 0 : i32
    %c0_i32_0 = arith.constant 0 : i32
    %c0_i32_1 = arith.constant 0 : i32
    return %c0_i32, %c0_i32_0 : i32, i32
  }
  func.func @transform_3(%arg0: i32) -> (i32, i32) {
    %c0_i32 = arith.constant 0 : i32
    %c0_i32_0 = arith.constant 0 : i32
    %c0_i32_1 = arith.constant 0 : i32
    return %c0_i32, %c0_i32_0 : i32, i32
  }
  func.func @transform_4(%arg0: i32) -> (i32, i32) {
    %c0_i32 = arith.constant 0 : i32
    %c0_i32_0 = arith.constant 0 : i32
    %c0_i32_1 = arith.constant 0 : i32
    return %c0_i32, %c0_i32_0 : i32, i32
  }
  func.func @transform_5(%arg0: i32) -> (i32, i32) {
    %c0_i32 = arith.constant 0 : i32
    %c0_i32_0 = arith.constant 0 : i32
    %c0_i32_1 = arith.constant 0 : i32
    return %c0_i32, %c0_i32_0 : i32, i32
  }
  func.func @transform_6(%arg0: i32) -> (i32, i32) {
    %c0_i32 = arith.constant 0 : i32
    %c0_i32_0 = arith.constant 0 : i32
    %c0_i32_1 = arith.constant 0 : i32
    return %c0_i32, %c0_i32_0 : i32, i32
  }
  func.func @transform_7(%arg0: i32) -> (i32, i32) {
    %c0_i32 = arith.constant 0 : i32
    %c0_i32_0 = arith.constant 0 : i32
    return %arg0, %c0_i32 : i32, i32
  }
}

</mosaic_0001>

<bundles_post_ra>
// kernel: tpu_custom_call.1
= control target key start
LH: loop header
LB: loop body
LE: loop exit
PB: predicated region body
PF: predicated region fallthrough
CT: control target
= control target key end

     0   :  { %12 = vsyncpa [#allocation3], 0  ;;  %s1606_s0 = inlined_call_operand.hbm [shape: bf16[64,128], index: 0, kind: input, shape index: {}]   ;;  %s1607_s1 = inlined_call_operand.hbm [shape: bf16[128,256], index: 1, kind: input, shape index: {}]   ;;  %s1608_s2 = inlined_call_operand.hbm [shape: f32[1,256], index: 2, kind: input, shape index: {}]   ;;  %s1609_s3 = inlined_call_operand.hbm [shape: bf16[256,256], index: 3, kind: input, shape index: {}]   ;;  %s1610_s4 = inlined_call_operand.vmem [shape: f32[1,256], index: 4, kind: input, shape index: {}]   ;;  %s1611_s5 = inlined_call_operand.hbm [shape: bf16[256,128], index: 5, kind: input, shape index: {}]   ;;  %s1612_s6 = inlined_call_operand.vmem [shape: f32[1,128], index: 6, kind: input, shape index: {}]   ;;  %s1613_s7 = inlined_call_operand.hbm [shape: f32[64,128], index: 7, kind: output, shape index: {}]  }
   0x1   :  { %13 = vsyncpa [#allocation6], 0 }
   0x2   :  { %14 = vsyncpa [#allocation9], 0  ;;  %s33_s26 = sshll.u32 %s1607_s1, 4  ;;  %s34_s26 = int_to_ptr.hbm [resolvable:$true] %s33_s26 }
   0x3   :  { %15 = vsyncpa [#allocation4], 0  ;;  %s1483_s27 = smov [#allocation5]   ;;  %s57_s8 = sshll.u32 %s1609_s3, 4  ;;  %s58_s8 = int_to_ptr.hbm [resolvable:$true] %s57_s8 }
   0x4   :  { %s35_s28 = sshll.u32 %s1483_s27, 4  ;;  %s1484_s9 = smov 128   ;;  %s36_s28 = int_to_ptr.vmem [resolvable:$true] %s35_s28 }
   0x5   :  { %s1485_s10 = smov 8   ;;  %s1486_s11 = smov [#allocation8]  }
   0x6   :  { %41 = dma.hbm_to_vmem [thread:$0]  %s34_s26, 2048, %s36_s28, [#allocation6], %s1484_s9, %s1484_s9, %s1485_s10  }
   0x7   :  { %s59_s12 = sshll.u32 %s1486_s11, 4  ;;  %s20_s14 = sshll.u32 %s1606_s0, 4  ;;  %s60_s12 = int_to_ptr.vmem [resolvable:$true] %s59_s12  ;;  %s21_s14 = int_to_ptr.hbm [resolvable:$true] %s20_s14 }
   0x8   :  { %65 = dma.hbm_to_vmem [thread:$0]  %s58_s8, 4096, %s60_s12, [#allocation9], %s1484_s9, %s1484_s9, %s1485_s10  }
   0x9   :  { %s1487_s3 = smov [#allocation2]   ;;  %s47_s18 = sshll.u32 %s1608_s2, 4  ;;  %s48_s18 = int_to_ptr.hbm [resolvable:$true] %s47_s18 }
   0xa   :  { %s22_s15 = sshll.u32 %s1487_s3, 4  ;;  %s1488_s19 = smov 64   ;;  %s23_s15 = int_to_ptr.vmem [resolvable:$true] %s22_s15 }
   0xb   :  { %s1489_s20 = smov 4   ;;  %s1490_s21 = smov [#allocation7]  }
   0xc   :  { %28 = dma.hbm_to_vmem [thread:$0]  %s21_s14, 512, %s23_s15, [#allocation3], %s1488_s19, %s1488_s19, %s1489_s20  }
   0xd   :  { %s49_s22 = sshll.u32 %s1490_s21, 4  ;;  %s72_s24 = sshll.u32 %s1611_s5, 4  ;;  %s50_s22 = int_to_ptr.vmem [resolvable:$true] %s49_s22  ;;  %s73_s24 = int_to_ptr.hbm [resolvable:$true] %s72_s24 }
   0xe   :  { %52 = dma.hbm_to_vmem [thread:$0]  %s48_s18, 32, %s50_s22, [#allocation6]  }
   0xf   :  { %s1491_s25 = smov [#allocation10]  }
  0x10   :  { %s74_s26 = sshll.u32 %s1491_s25, 4  ;;  %s75_s26 = int_to_ptr.vmem [resolvable:$true] %s74_s26 }
  0x11   :  { %80 = dma.hbm_to_vmem [thread:$0]  %s73_s24, 2048, %s75_s26, [#allocation9], %s1488_s19, %s1488_s19, %s1489_s20  }
  0x12   :  { %1475 = dma.done.wait [#allocation3], 512  }
  0x13   :  { %1476 = vsyncadd [#allocation3], 4294966784 }
  0x14   :  { %1477 = dma.done.wait [#allocation6], 2080  }
  0x15   :  { %1478 = vsyncadd [#allocation6], 4294965216 }
  0x16   :  { %1479 = dma.done.wait [#allocation9], 6144  }
  0x17   :  { %1480 = vsyncadd [#allocation9], 4294961152  ;;  %v1022_v0 = vld [vmem:[#allocation5 + $0x70] sm:$0xf]  ;;  %v1239_v1 = vld [vmem:[#allocation5 + $0x74] sm:$0xf0] }
  0x18   :  { %v1238_v2 = vld [vmem:[#allocation5 + $0x74] sm:$0xf]  ;;  %v1023_v3 = vor.u32 %v1239_v1, %v1022_v0  ;;  %v1024_v4 = vld [vmem:[#allocation5 + $0x78] sm:$0xf0]  ;;  %v1014_v5 = vld [vmem:[#allocation5 + $0x60] sm:$0xf] }
  0x19   :  { %v1237_v6 = vld [vmem:[#allocation5 + $0x64] sm:$0xf0]  ;;  %v1027_v7 = vor.u32 %v1238_v2, %v1024_v4  ;;  %v1236_v8 = vld [vmem:[#allocation5 + $0x64] sm:$0xf]  ;;  %v1016_v9 = vld [vmem:[#allocation5 + $0x68] sm:$0xf0] }
  0x1a   :  { %237 = vmatpush.bf16.msra.mxu0 %v1023_v3  ;;  %v1015_v10 = vor.u32 %v1237_v6, %v1014_v5  ;;  %v1019_v11 = vor.u32 %v1236_v8, %v1016_v9  ;;  %v1006_v12 = vld [vmem:[#allocation5 + $0x50] sm:$0xf]  ;;  %v1235_v13 = vld [vmem:[#allocation5 + $0x54] sm:$0xf0]  ;;  %v1234_v14 = vld [vmem:[#allocation5 + $0x54] sm:$0xf] }
  0x1b   :  { %266 = vmatpush.bf16.msra.mxu1 %v1027_v7  ;;  %v1008_v15 = vld [vmem:[#allocation5 + $0x58] sm:$0xf0]  ;;  %v1007_v16 = vor.u32 %v1235_v13, %v1006_v12  ;;  %v998_v18 = vld [vmem:[#allocation5 + $0x40] sm:$0xf]  ;;  %v1233_v19 = vld [vmem:[#allocation5 + $0x44] sm:$0xf0] }
  0x1c   :  { %v1011_v17 = vor.u32 %v1234_v14, %v1008_v15  ;;  %v1232_v20 = vld [vmem:[#allocation5 + $0x44] sm:$0xf]  ;;  %v1000_v21 = vld [vmem:[#allocation5 + $0x48] sm:$0xf0]  ;;  %v999_v22 = vor.u32 %v1233_v19, %v998_v18  ;;  %v990_v24 = vld [vmem:[#allocation5 + $0x30] sm:$0xf] }
  0x1d   :  { %v1003_v23 = vor.u32 %v1232_v20, %v1000_v21  ;;  %v1231_v25 = vld [vmem:[#allocation5 + $0x34] sm:$0xf0]  ;;  %v1230_v26 = vld [vmem:[#allocation5 + $0x34] sm:$0xf]  ;;  %v992_v27 = vld [vmem:[#allocation5 + $0x38] sm:$0xf0] }
  0x1e   :  { %238 = vmatpush.bf16.msra.mxu0 %v1015_v10  ;;  %v991_v28 = vor.u32 %v1231_v25, %v990_v24  ;;  %v995_v29 = vor.u32 %v1230_v26, %v992_v27  ;;  %v982_v30 = vld [vmem:[#allocation5 + $0x20] sm:$0xf]  ;;  %v1229_v31 = vld [vmem:[#allocation5 + $0x24] sm:$0xf0]  ;;  %v1228_v32 = vld [vmem:[#allocation5 + $0x24] sm:$0xf] }
  0x1f   :  { %267 = vmatpush.bf16.msra.mxu1 %v1019_v11  ;;  %v984_v33 = vld [vmem:[#allocation5 + $0x28] sm:$0xf0]  ;;  %v983_v34 = vor.u32 %v1229_v31, %v982_v30  ;;  %v974_v36 = vld [vmem:[#allocation5 + $0x10] sm:$0xf]  ;;  %v1227_v37 = vld [vmem:[#allocation5 + $0x14] sm:$0xf0] }
  0x20   :  { %v987_v35 = vor.u32 %v1228_v32, %v984_v33  ;;  %v1226_v38 = vld [vmem:[#allocation5 + $0x14] sm:$0xf]  ;;  %v976_v39 = vld [vmem:[#allocation5 + $0x18] sm:$0xf0]  ;;  %v975_v40 = vor.u32 %v1227_v37, %v974_v36  ;;  %v966_v42 = vld [vmem:[#allocation5] sm:$0xf] }
  0x21   :  { %v979_v41 = vor.u32 %v1226_v38, %v976_v39  ;;  %v1225_v43 = vld [vmem:[#allocation5 + $0x4] sm:$0xf0]  ;;  %v1224_v44 = vld [vmem:[#allocation5 + $0x4] sm:$0xf]  ;;  %v968_v45 = vld [vmem:[#allocation5 + $0x8] sm:$0xf0] }
  0x22   :  { %239 = vmatpush.bf16.msra.mxu0 %v1007_v16  ;;  %v967_v46 = vor.u32 %v1225_v43, %v966_v42  ;;  %v971_v47 = vor.u32 %v1224_v44, %v968_v45  ;;  %v1220_v48 = vld [vmem:[#allocation2] sm:$0xff]  ;;  %v1221_v49 = vld [vmem:[#allocation2 + $0x8] sm:$0xff]  ;;  %v1254_v50 = vld [vmem:[#allocation8 + $0x74] sm:$0xf]  ;;  %s933_s8 = sshll.u32 %s1613_s7, 4  ;;  %s934_s8 = int_to_ptr.hbm [resolvable:$true] %s933_s8 }
  0x23   :  { %268 = vmatpush.bf16.msra.mxu1 %v1011_v17  ;;  %v1088_v51 = vld [vmem:[#allocation8 + $0x78] sm:$0xf0]  ;;  %v1270_v52 = vld [vmem:[#allocation8 + $0xf4] sm:$0xf]  ;;  %v1252_v55 = vld [vmem:[#allocation8 + $0x64] sm:$0xf] }
  0x24   :  { %v1091_v53 = vor.u32 %v1254_v50, %v1088_v51  ;;  %v1152_v54 = vld [vmem:[#allocation8 + $0xf8] sm:$0xf0]  ;;  %v1080_v56 = vld [vmem:[#allocation8 + $0x68] sm:$0xf0]  ;;  %v1268_v58 = vld [vmem:[#allocation8 + $0xe4] sm:$0xf] }
  0x25   :  { %v1155_v57 = vor.u32 %v1270_v52, %v1152_v54  ;;  %v1144_v59 = vld [vmem:[#allocation8 + $0xe8] sm:$0xf0]  ;;  %v1083_v60 = vor.u32 %v1252_v55, %v1080_v56  ;;  %v1250_v61 = vld [vmem:[#allocation8 + $0x54] sm:$0xf]  ;;  %v1072_v62 = vld [vmem:[#allocation8 + $0x58] sm:$0xf0] }
  0x26   :  { %240 = vmatpush.bf16.msra.mxu0 %v999_v22  ;;  %v1147_v63 = vor.u32 %v1268_v58, %v1144_v59  ;;  %v1266_v0 = vld [vmem:[#allocation8 + $0xd4] sm:$0xf]  ;;  %v1136_v1 = vld [vmem:[#allocation8 + $0xd8] sm:$0xf0]  ;;  %v1086_v2 = vld [vmem:[#allocation8 + $0x70] sm:$0xf]  ;;  %v1075_v9 = vor.u32 %v1250_v61, %v1072_v62 }
  0x27   :  { %269 = vmatpush.bf16.msra.mxu1 %v1003_v23  ;;  %v1255_v3 = vld [vmem:[#allocation8 + $0x74] sm:$0xf0]  ;;  %v1150_v4 = vld [vmem:[#allocation8 + $0xf0] sm:$0xf]  ;;  %v1078_v8 = vld [vmem:[#allocation8 + $0x60] sm:$0xf]  ;;  %v1139_v13 = vor.u32 %v1266_v0, %v1136_v1 }
  0x28   :  { %v1271_v5 = vld [vmem:[#allocation8 + $0xf4] sm:$0xf0]  ;;  %v1087_v6 = vor.u32 %v1255_v3, %v1086_v2  ;;  %v1253_v10 = vld [vmem:[#allocation8 + $0x64] sm:$0xf0]  ;;  %v1142_v11 = vld [vmem:[#allocation8 + $0xe0] sm:$0xf] }
  0x29   :  { %v1151_v7 = vor.u32 %v1271_v5, %v1150_v4  ;;  %v1269_v12 = vld [vmem:[#allocation8 + $0xe4] sm:$0xf0]  ;;  %v1079_v14 = vor.u32 %v1253_v10, %v1078_v8  ;;  %v1248_v15 = vld [vmem:[#allocation8 + $0x44] sm:$0xf]  ;;  %v1064_v16 = vld [vmem:[#allocation8 + $0x48] sm:$0xf0] }
  0x2a   :  { %241 = vmatpush.bf16.msra.mxu0 %v991_v28  ;;  %517 = vmatpush.bf16.msra.mxu2 %v1087_v6  ;;  %v1264_v17 = vld [vmem:[#allocation8 + $0xc4] sm:$0xf]  ;;  %v1143_v18 = vor.u32 %v1269_v12, %v1142_v11  ;;  %v1128_v19 = vld [vmem:[#allocation8 + $0xc8] sm:$0xf0]  ;;  %v1070_v20 = vld [vmem:[#allocation8 + $0x50] sm:$0xf]  ;;  %v1067_v25 = vor.u32 %v1248_v15, %v1064_v16 }
  0x2b   :  { %270 = vmatpush.bf16.msra.mxu1 %v995_v29  ;;  %546 = vmatpush.bf16.msra.mxu3 %v1151_v7  ;;  %v1251_v21 = vld [vmem:[#allocation8 + $0x54] sm:$0xf0]  ;;  %v1222_v22 = vld [vmem:[#allocation2 + $0x10] sm:$0xff]  ;;  %v1131_v26 = vor.u32 %v1264_v17, %v1128_v19  ;;  %v1056_v28 = vld [vmem:[#allocation8 + $0x38] sm:$0xf0] }
  0x2c   :  { %v1134_v23 = vld [vmem:[#allocation8 + $0xd0] sm:$0xf]  ;;  %v1267_v24 = vld [vmem:[#allocation8 + $0xd4] sm:$0xf0]  ;;  %v1246_v27 = vld [vmem:[#allocation8 + $0x34] sm:$0xf]  ;;  %v1071_v29 = vor.u32 %v1251_v21, %v1070_v20 }
  0x2d   :  { %v1262_v30 = vld [vmem:[#allocation8 + $0xb4] sm:$0xf]  ;;  %v1135_v31 = vor.u32 %v1267_v24, %v1134_v23  ;;  %v1120_v32 = vld [vmem:[#allocation8 + $0xb8] sm:$0xf0]  ;;  %v1062_v33 = vld [vmem:[#allocation8 + $0x40] sm:$0xf]  ;;  %v1059_v37 = vor.u32 %v1246_v27, %v1056_v28 }
  0x2e   :  { %242 = vmatpush.bf16.msra.mxu0 %v983_v34  ;;  %518 = vmatpush.bf16.msra.mxu2 %v1079_v14  ;;  %v1249_v34 = vld [vmem:[#allocation8 + $0x44] sm:$0xf0]  ;;  %v1123_v38 = vor.u32 %v1262_v30, %v1120_v32  ;;  %v1223_v44 = vld [vmem:[#allocation2 + $0x18] sm:$0xff]  ;;  %v1054_v45 = vld [vmem:[#allocation8 + $0x30] sm:$0xf] }
  0x2f   :  { %271 = vmatpush.bf16.msra.mxu1 %v987_v35  ;;  %547 = vmatpush.bf16.msra.mxu3 %v1143_v18  ;;  %v1126_v35 = vld [vmem:[#allocation8 + $0xc0] sm:$0xf]  ;;  %v1265_v36 = vld [vmem:[#allocation8 + $0xc4] sm:$0xf0]  ;;  %v1063_v39 = vor.u32 %v1249_v34, %v1062_v33  ;;  %v1260_v51 = vld [vmem:[#allocation8 + $0xa4] sm:$0xf] }
  0x30   :  { %v1127_v42 = vor.u32 %v1265_v36, %v1126_v35  ;;  %v1112_v52 = vld [vmem:[#allocation8 + $0xa8] sm:$0xf0]  ;;  %v1046_v54 = vld [vmem:[#allocation8 + $0x20] sm:$0xf]  ;;  %v1245_v55 = vld [vmem:[#allocation8 + $0x24] sm:$0xf0] }
  0x31   :  { %v1110_v56 = vld [vmem:[#allocation8 + $0xa0] sm:$0xf]  ;;  %v1261_v58 = vld [vmem:[#allocation8 + $0xa4] sm:$0xf0]  ;;  %v1242_v59 = vld [vmem:[#allocation8 + $0x14] sm:$0xf] }
  0x32   :  { %243 = vmatpush.bf16.msra.mxu0 %v975_v40  ;;  %519 = vmatpush.bf16.msra.mxu2 %v1071_v29  ;;  %v1244_v40 = vld [vmem:[#allocation8 + $0x24] sm:$0xf]  ;;  %v1111_v61 = vor.u32 %v1261_v58, %v1110_v56  ;;  %v1243_v0 = vld [vmem:[#allocation8 + $0x14] sm:$0xf0]  ;;  %v1102_v1 = vld [vmem:[#allocation8 + $0x90] sm:$0xf] }
  0x33   :  { %272 = vmatpush.bf16.msra.mxu1 %v979_v41  ;;  %v1048_v41 = vld [vmem:[#allocation8 + $0x28] sm:$0xf0]  ;;  %548 = vmatpush.bf16.msra.mxu3 %v1135_v31  ;;  %v1259_v3 = vld [vmem:[#allocation8 + $0x94] sm:$0xf0]  ;;  %v1258_v4 = vld [vmem:[#allocation8 + $0x94] sm:$0xf] }
  0x34   :  { %v1051_v43 = vor.u32 %v1244_v40, %v1048_v41  ;;  %v1104_v5 = vld [vmem:[#allocation8 + $0x98] sm:$0xf0]  ;;  %v1103_v6 = vor.u32 %v1259_v3, %v1102_v1  ;;  %v1030_v8 = vld [vmem:[#allocation8] sm:$0xf]  ;;  %v1257_v12 = vld [vmem:[#allocation8 + $0x84] sm:$0xf0] }
  0x35   :  { %v1107_v7 = vor.u32 %v1258_v4, %v1104_v5  ;;  %v1094_v10 = vld [vmem:[#allocation8 + $0x80] sm:$0xf]  ;;  %v1032_v14 = vld [vmem:[#allocation8 + $0x8] sm:$0xf0]  ;;  %v1256_v17 = vld [vmem:[#allocation8 + $0x84] sm:$0xf] }
  0x36   :  { %244 = vmatpush.bf16.msra.mxu0 %v967_v46  ;;  %520 = vmatpush.bf16.msra.mxu2 %v1063_v39  ;;  %v1247_v46 = vld [vmem:[#allocation8 + $0x34] sm:$0xf0]  ;;  %v1095_v15 = vor.u32 %v1257_v12, %v1094_v10  ;;  %v1096_v18 = vld [vmem:[#allocation8 + $0x88] sm:$0xf0]  ;;  %v127_v20 = vld [vmem:[#allocation7] sm:$0x3] }
  0x37   :  { %273 = vmatpush.bf16.msra.mxu1 %v971_v47  ;;  %549 = vmatpush.bf16.msra.mxu3 %v1127_v42  ;;  %v1118_v47 = vld [vmem:[#allocation8 + $0xb0] sm:$0xf]  ;;  %v1099_v19 = vor.u32 %v1256_v17, %v1096_v18  ;;  %v1554_v23 = vperm.slane %v127_v20, 0  ;;  %v1556_v24 = vperm.slane %v127_v20, 1  ;;  %v1285_v58 = vld [vmem:[#allocation10 + $0x68] sm:$0xff]  ;;  %v1276_v1 = vld [vmem:[#allocation10 + $0x20] sm:$0xff] }
  0x38   :  { %v1286_v56 = vld [vmem:[#allocation10 + $0x70] sm:$0xff]  ;;  %v1283_v10 = vld [vmem:[#allocation10 + $0x58] sm:$0xff] }
  0x39   :  { %245 = vmatmul.bf16.vlgmr.msra.gmra.mxu0 %v1220_v48 }
  0x3a   :  { %274 = vmatmul.bf16.vlgmr.msra.gmra.mxu1 %v1220_v48  ;;  %575 = vmatpush.bf16.msrb.mxu0 %v1091_v53  ;;  %v1055_v48 = vor.u32 %v1247_v46, %v1054_v45  ;;  %v1115_v53 = vor.u32 %v1260_v51, %v1112_v52  ;;  %v1279_v52 = vld [vmem:[#allocation10 + $0x38] sm:$0xff] }
  0x3b   :  { %604 = vmatpush.bf16.msrb.mxu1 %v1155_v57  ;;  %v1047_v57 = vor.u32 %v1245_v55, %v1046_v54  ;;  %v1278_v55 = vld [vmem:[#allocation10 + $0x30] sm:$0xff] }
  0x3c   :  { %521 = vmatpush.bf16.msra.mxu2 %v1055_v48 }
  0x3e   :  { %576 = vmatpush.bf16.msrb.mxu0 %v1083_v60  ;;  %v1040_v60 = vld [vmem:[#allocation8 + $0x18] sm:$0xf0] }
  0x3f   :  { %605 = vmatpush.bf16.msrb.mxu1 %v1147_v63  ;;  %v1043_v62 = vor.u32 %v1242_v59, %v1040_v60  ;;  %v1038_v63 = vld [vmem:[#allocation8 + $0x10] sm:$0xf] }
  0x40   :  { %522 = vmatpush.bf16.msra.mxu2 %v1047_v57  ;;  %v1039_v2 = vor.u32 %v1243_v0, %v1038_v63  ;;  %v1277_v57 = vld [vmem:[#allocation10 + $0x28] sm:$0xff] }
  0x42   :  { %577 = vmatpush.bf16.msrb.mxu0 %v1075_v9  ;;  %v1241_v9 = vld [vmem:[#allocation8 + $0x4] sm:$0xf0] }
  0x43   :  { %606 = vmatpush.bf16.msrb.mxu1 %v1139_v13  ;;  %v1031_v11 = vor.u32 %v1241_v9, %v1030_v8  ;;  %v1240_v13 = vld [vmem:[#allocation8 + $0x4] sm:$0xf]  ;;  %v1275_v9 = vld [vmem:[#allocation10 + $0x18] sm:$0xff] }
  0x44   :  { %523 = vmatpush.bf16.msra.mxu2 %v1039_v2  ;;  %v1035_v16 = vor.u32 %v1240_v13, %v1032_v14  ;;  %v1284_v2 = vld [vmem:[#allocation10 + $0x60] sm:$0xff]  ;;  %v1274_v13 = vld [vmem:[#allocation10 + $0x10] sm:$0xff] }
  0x46   :  { %578 = vmatpush.bf16.msrb.mxu0 %v1067_v25 }
  0x47   :  { %607 = vmatpush.bf16.msrb.mxu1 %v1131_v26 }
  0x48   :  { %524 = vmatpush.bf16.msra.mxu2 %v1031_v11 }
  0x49   :  { %250 = vmatmul.bf16.gmra.mxu0 %v1221_v49 }
  0x4a   :  { %279 = vmatmul.bf16.gmra.mxu1 %v1221_v49  ;;  %579 = vmatpush.bf16.msrb.mxu0 %v1059_v37  ;;  %v1263_v49 = vld [vmem:[#allocation8 + $0xb4] sm:$0xf0] }
  0x4b   :  { %608 = vmatpush.bf16.msrb.mxu1 %v1123_v38  ;;  %v1119_v50 = vor.u32 %v1263_v49, %v1118_v47 }
  0x4c   :  { %789 = vmatpush.bf16.msrb.mxu2 %v1279_v52 }
  0x4d   :  { %550 = vmatpush.bf16.msra.mxu3 %v1119_v50 }
  0x4e   :  { %580 = vmatpush.bf16.msrb.mxu0 %v1051_v43 }
  0x4f   :  { %609 = vmatpush.bf16.msrb.mxu1 %v1115_v53  ;;  %v1287_v53 = vld [vmem:[#allocation10 + $0x78] sm:$0xff] }
  0x50   :  { %790 = vmatpush.bf16.msrb.mxu2 %v1278_v55 }
  0x51   :  { %551 = vmatpush.bf16.msra.mxu3 %v1111_v61 }
  0x52   :  { %581 = vmatpush.bf16.msrb.mxu0 %v1043_v62 }
  0x53   :  { %610 = vmatpush.bf16.msrb.mxu1 %v1107_v7 }
  0x54   :  { %791 = vmatpush.bf16.msrb.mxu2 %v1277_v57 }
  0x55   :  { %552 = vmatpush.bf16.msra.mxu3 %v1103_v6 }
  0x56   :  { %582 = vmatpush.bf16.msrb.mxu0 %v1035_v16 }
  0x57   :  { %611 = vmatpush.bf16.msrb.mxu1 %v1099_v19 }
  0x58   :  { %792 = vmatpush.bf16.msrb.mxu2 %v1276_v1 }
  0x59   :  { %255 = vmatmul.bf16.gmra.mxu0 %v1222_v22  ;;  %553 = vmatpush.bf16.msra.mxu3 %v1095_v15 }
  0x5a   :  { %284 = vmatmul.bf16.gmra.mxu1 %v1222_v22 }
  0x5c   :  { %793 = vmatpush.bf16.msrb.mxu2 %v1275_v9 }
  0x5d   :  { %818 = vmatpush.bf16.msrb.mxu3 %v1287_v53 }
  0x60   :  { %794 = vmatpush.bf16.msrb.mxu2 %v1274_v13 }
  0x61   :  { %819 = vmatpush.bf16.msrb.mxu3 %v1286_v56 }
  0x65   :  { %820 = vmatpush.bf16.msrb.mxu3 %v1285_v58 }
  0x69   :  { %260 = vmatmul.bf16.gmra.mxu0 %v1223_v44  ;;  %821 = vmatpush.bf16.msrb.mxu3 %v1284_v2 }
  0x6a   :  { %289 = vmatmul.bf16.gmra.mxu1 %v1223_v44 }
  0x6d   :  { %822 = vmatpush.bf16.msrb.mxu3 %v1283_v10 }
  0xb6   :  { %v246_v21 = vpop.f32.mrf.mxu0 }
  0xb7   :  { %v275_v22 = vpop.f32.mrf.mxu1  ;;  %v247_v25 = vadd.f32 %v246_v21, %v1554_v23 }
  0xb8   :  { %v276_v26 = vadd.f32 %v275_v22, %v1556_v24 }
  0xb9   :  { %v295_v31 = vmax.f32 %v247_v25, 0.0 }
  0xba   :  { %v296_v33 = vmax.f32 %v276_v26, 0.0 }
  0xbe   :  { %v248_v27 = vpop.f32.mrf.mxu0 }
  0xbf   :  { %v249_v28 = vadd.f32 %v248_v27, %v1554_v23  ;;  %v277_v29 = vpop.f32.mrf.mxu1 }
  0xc0   :  { %v278_v30 = vadd.f32 %v277_v29, %v1556_v24  ;;  %v1281_v29 = vld [vmem:[#allocation10 + $0x48] sm:$0xff] }
  0xc1   :  { %v297_v32 = vmax.f32 %v249_v28, 0.0  ;;  %v1282_v28 = vld [vmem:[#allocation10 + $0x50] sm:$0xff] }
  0xc2   :  { %v298_v34 = vmax.f32 %v278_v30, 0.0  ;;  %823 = vmatpush.bf16.msrb.mxu3 %v1282_v28  ;;  %v1273_v30 = vld [vmem:[#allocation10 + $0x8] sm:$0xff] }
  0xc3   :  { %v311_v35 = vpack.c.bf16 %v297_v32, %v295_v31  ;;  %795 = vmatpush.bf16.msrb.mxu2 %v1273_v30  ;;  %v1272_v31 = vld [vmem:[#allocation10] sm:$0xff] }
  0xc4   :  { %v312_v36 = vpack.c.bf16 %v298_v34, %v296_v33 }
  0xc5   :  { %525 = vmatmul.bf16.vlgmr.msra.gmra.mxu2 %v311_v35  ;;  %583 = vmatmul.bf16.vlgmr.msrb.gmra.mxu0 %v311_v35 }
  0xc6   :  { %554 = vmatmul.bf16.vlgmr.msra.gmra.mxu3 %v312_v36  ;;  %612 = vmatmul.bf16.vlgmr.msrb.gmra.mxu1 %v312_v36  ;;  %v251_v37 = vpop.f32.mrf.mxu0 }
  0xc7   :  { %v280_v38 = vpop.f32.mrf.mxu1  ;;  %v252_v39 = vadd.f32 %v251_v37, %v1554_v23  ;;  %824 = vmatpush.bf16.msrb.mxu3 %v1281_v29  ;;  %796 = vmatpush.bf16.msrb.mxu2 %v1272_v31 }
  0xc8   :  { %v281_v40 = vadd.f32 %v280_v38, %v1556_v24 }
  0xc9   :  { %v299_v45 = vmax.f32 %v252_v39, 0.0 }
  0xca   :  { %v300_v47 = vmax.f32 %v281_v40, 0.0 }
  0xce   :  { %v253_v41 = vpop.f32.mrf.mxu0 }
  0xcf   :  { %v254_v42 = vadd.f32 %v253_v41, %v1554_v23  ;;  %v282_v43 = vpop.f32.mrf.mxu1 }
  0xd0   :  { %v283_v44 = vadd.f32 %v282_v43, %v1556_v24 }
  0xd1   :  { %v301_v46 = vmax.f32 %v254_v42, 0.0 }
  0xd2   :  { %v302_v48 = vmax.f32 %v283_v44, 0.0 }
  0xd3   :  { %v313_v49 = vpack.c.bf16 %v301_v46, %v299_v45 }
  0xd4   :  { %v314_v50 = vpack.c.bf16 %v302_v48, %v300_v47 }
  0xd5   :  { %530 = vmatmul.bf16.gmra.mxu2 %v313_v49  ;;  %588 = vmatmul.bf16.gmra.mxu0 %v313_v49 }
  0xd6   :  { %559 = vmatmul.bf16.gmra.mxu3 %v314_v50  ;;  %617 = vmatmul.bf16.gmra.mxu1 %v314_v50  ;;  %v256_v51 = vpop.f32.mrf.mxu0 }
  0xd7   :  { %v285_v54 = vpop.f32.mrf.mxu1  ;;  %v257_v59 = vadd.f32 %v256_v51, %v1554_v23 }
  0xd8   :  { %v286_v60 = vadd.f32 %v285_v54, %v1556_v24 }
  0xd9   :  { %v303_v3 = vmax.f32 %v257_v59, 0.0 }
  0xda   :  { %v304_v5 = vmax.f32 %v286_v60, 0.0 }
  0xde   :  { %v258_v61 = vpop.f32.mrf.mxu0 }
  0xdf   :  { %v259_v62 = vadd.f32 %v258_v61, %v1554_v23  ;;  %v287_v63 = vpop.f32.mrf.mxu1 }
  0xe0   :  { %v288_v0 = vadd.f32 %v287_v63, %v1556_v24 }
  0xe1   :  { %v305_v4 = vmax.f32 %v259_v62, 0.0 }
  0xe2   :  { %v306_v6 = vmax.f32 %v288_v0, 0.0 }
  0xe3   :  { %v315_v7 = vpack.c.bf16 %v305_v4, %v303_v3 }
  0xe4   :  { %v316_v8 = vpack.c.bf16 %v306_v6, %v304_v5 }
  0xe5   :  { %535 = vmatmul.bf16.gmra.mxu2 %v315_v7  ;;  %593 = vmatmul.bf16.gmra.mxu0 %v315_v7 }
  0xe6   :  { %564 = vmatmul.bf16.gmra.mxu3 %v316_v8  ;;  %622 = vmatmul.bf16.gmra.mxu1 %v316_v8  ;;  %v261_v11 = vpop.f32.mrf.mxu0 }
  0xe7   :  { %v290_v12 = vpop.f32.mrf.mxu1  ;;  %v262_v14 = vadd.f32 %v261_v11, %v1554_v23 }
  0xe8   :  { %v291_v15 = vadd.f32 %v290_v12, %v1556_v24 }
  0xe9   :  { %v307_v20 = vmax.f32 %v262_v14, 0.0 }
  0xea   :  { %v308_v22 = vmax.f32 %v291_v15, 0.0 }
  0xee   :  { %v263_v16 = vpop.f32.mrf.mxu0 }
  0xef   :  { %v264_v17 = vadd.f32 %v263_v16, %v1554_v23  ;;  %v292_v18 = vpop.f32.mrf.mxu1  ;;  %v1280_v23 = vld [vmem:[#allocation10 + $0x40] sm:$0xff] }
  0xf0   :  { %v293_v19 = vadd.f32 %v292_v18, %v1556_v24  ;;  %825 = vmatpush.bf16.msrb.mxu3 %v1280_v23  ;;  %v351_v24 = vld [vmem:[%s1610_s4] sm:$0x3] }
  0xf1   :  { %v309_v21 = vmax.f32 %v264_v17, 0.0  ;;  %v1577_v33 = vperm.slane %v351_v24, 1  ;;  %v1580_v37 = vperm.slane %v351_v24, 0 }
  0xf2   :  { %v310_v25 = vmax.f32 %v293_v19, 0.0 }
  0xf3   :  { %v317_v26 = vpack.c.bf16 %v309_v21, %v307_v20 }
  0xf4   :  { %v318_v27 = vpack.c.bf16 %v310_v25, %v308_v22 }
  0xf5   :  { %540 = vmatmul.bf16.gmra.mxu2 %v317_v26  ;;  %598 = vmatmul.bf16.gmra.mxu0 %v317_v26 }
  0xf6   :  { %569 = vmatmul.bf16.gmra.mxu3 %v318_v27  ;;  %627 = vmatmul.bf16.gmra.mxu1 %v318_v27 }
 0x142   :  { %v584_v32 = vpop.f32.mrf.mxu0 }
 0x143   :  { %v613_v34 = vpop.f32.mrf.mxu1  ;;  %v585_v35 = vadd.f32 %v584_v32, %v1577_v33 }
 0x145   :  { %v614_v40 = vadd.f32 %v613_v34, %v585_v35 }
 0x147   :  { %v634_v45 = vmax.f32 %v614_v40, 0.0 }
 0x148   :  { %v526_v36 = vpop.f32.mrf.mxu2 }
 0x149   :  { %v555_v38 = vpop.f32.mrf.mxu3  ;;  %v527_v43 = vadd.f32 %v526_v36, %v1580_v37 }
 0x14a   :  { %v586_v39 = vpop.f32.mrf.mxu0 }
 0x14b   :  { %v587_v41 = vadd.f32 %v586_v39, %v1577_v33  ;;  %v615_v42 = vpop.f32.mrf.mxu1  ;;  %v556_v48 = vadd.f32 %v555_v38, %v527_v43 }
 0x14d   :  { %v616_v44 = vadd.f32 %v615_v42, %v587_v41  ;;  %v633_v55 = vmax.f32 %v556_v48, 0.0 }
 0x14f   :  { %v636_v46 = vmax.f32 %v616_v44, 0.0 }
 0x150   :  { %v528_v47 = vpop.f32.mrf.mxu2 }
 0x151   :  { %v650_v49 = vpack.c.bf16 %v636_v46, %v634_v45  ;;  %v529_v50 = vadd.f32 %v528_v47, %v1580_v37  ;;  %v557_v51 = vpop.f32.mrf.mxu3 }
 0x152   :  { %v589_v52 = vpop.f32.mrf.mxu0 }
 0x153   :  { %v558_v53 = vadd.f32 %v557_v51, %v529_v50  ;;  %v618_v54 = vpop.f32.mrf.mxu1  ;;  %826 = vmatmul.bf16.vlgmr.msrb.gmra.mxu3 %v650_v49  ;;  %v590_v58 = vadd.f32 %v589_v52, %v1577_v33 }
 0x155   :  { %v635_v56 = vmax.f32 %v558_v53, 0.0  ;;  %v619_v62 = vadd.f32 %v618_v54, %v590_v58 }
 0x157   :  { %v649_v57 = vpack.c.bf16 %v635_v56, %v633_v55  ;;  %v638_v3 = vmax.f32 %v619_v62, 0.0 }
 0x158   :  { %v531_v59 = vpop.f32.mrf.mxu2 }
 0x159   :  { %v560_v60 = vpop.f32.mrf.mxu3  ;;  %797 = vmatmul.bf16.vlgmr.msrb.gmra.mxu2 %v649_v57  ;;  %v532_v1 = vadd.f32 %v531_v59, %v1580_v37 }
 0x15a   :  { %v591_v61 = vpop.f32.mrf.mxu0 }
 0x15b   :  { %v592_v63 = vadd.f32 %v591_v61, %v1577_v33  ;;  %v620_v0 = vpop.f32.mrf.mxu1  ;;  %v561_v6 = vadd.f32 %v560_v60, %v532_v1 }
 0x15d   :  { %v621_v2 = vadd.f32 %v620_v0, %v592_v63  ;;  %v637_v13 = vmax.f32 %v561_v6, 0.0 }
 0x15f   :  { %v640_v4 = vmax.f32 %v621_v2, 0.0 }
 0x160   :  { %v533_v5 = vpop.f32.mrf.mxu2 }
 0x161   :  { %v534_v7 = vadd.f32 %v533_v5, %v1580_v37  ;;  %v562_v8 = vpop.f32.mrf.mxu3  ;;  %v652_v9 = vpack.c.bf16 %v640_v4, %v638_v3 }
 0x162   :  { %v594_v10 = vpop.f32.mrf.mxu0 }
 0x163   :  { %v563_v11 = vadd.f32 %v562_v8, %v534_v7  ;;  %v623_v12 = vpop.f32.mrf.mxu1  ;;  %831 = vmatmul.bf16.gmra.mxu3 %v652_v9  ;;  %v595_v15 = vadd.f32 %v594_v10, %v1577_v33 }
 0x165   :  { %v639_v14 = vmax.f32 %v563_v11, 0.0  ;;  %v624_v20 = vadd.f32 %v623_v12, %v595_v15 }
 0x167   :  { %v651_v16 = vpack.c.bf16 %v639_v14, %v637_v13  ;;  %v642_v27 = vmax.f32 %v624_v20, 0.0 }
 0x168   :  { %v536_v17 = vpop.f32.mrf.mxu2 }
 0x169   :  { %v565_v18 = vpop.f32.mrf.mxu3  ;;  %802 = vmatmul.bf16.gmra.mxu2 %v651_v16  ;;  %v537_v25 = vadd.f32 %v536_v17, %v1580_v37 }
 0x16a   :  { %v596_v19 = vpop.f32.mrf.mxu0 }
 0x16b   :  { %v597_v21 = vadd.f32 %v596_v19, %v1577_v33  ;;  %v625_v22 = vpop.f32.mrf.mxu1  ;;  %v566_v30 = vadd.f32 %v565_v18, %v537_v25 }
 0x16d   :  { %v626_v26 = vadd.f32 %v625_v22, %v597_v21  ;;  %v641_v36 = vmax.f32 %v566_v30, 0.0 }
 0x16f   :  { %v644_v28 = vmax.f32 %v626_v26, 0.0 }
 0x170   :  { %v538_v29 = vpop.f32.mrf.mxu2 }
 0x171   :  { %v539_v23 = vadd.f32 %v538_v29, %v1580_v37  ;;  %v567_v31 = vpop.f32.mrf.mxu3  ;;  %v654_v24 = vpack.c.bf16 %v644_v28, %v642_v27 }
 0x172   :  { %v599_v32 = vpop.f32.mrf.mxu0 }
 0x173   :  { %v568_v34 = vadd.f32 %v567_v31, %v539_v23  ;;  %v628_v35 = vpop.f32.mrf.mxu1  ;;  %836 = vmatmul.bf16.gmra.mxu3 %v654_v24  ;;  %v600_v39 = vadd.f32 %v599_v32, %v1577_v33 }
 0x175   :  { %v643_v38 = vmax.f32 %v568_v34, 0.0  ;;  %v629_v44 = vadd.f32 %v628_v35, %v600_v39 }
 0x177   :  { %v653_v40 = vpack.c.bf16 %v643_v38, %v641_v36  ;;  %v646_v49 = vmax.f32 %v629_v44, 0.0 }
 0x178   :  { %v541_v41 = vpop.f32.mrf.mxu2 }
 0x179   :  { %v570_v42 = vpop.f32.mrf.mxu3  ;;  %807 = vmatmul.bf16.gmra.mxu2 %v653_v40  ;;  %v542_v47 = vadd.f32 %v541_v41, %v1580_v37 }
 0x17a   :  { %v601_v43 = vpop.f32.mrf.mxu0 }
 0x17b   :  { %v602_v45 = vadd.f32 %v601_v43, %v1577_v33  ;;  %v630_v46 = vpop.f32.mrf.mxu1  ;;  %v571_v52 = vadd.f32 %v570_v42, %v542_v47  ;;  %v1298_v33 = vld [vmem:[%s1612_s6] ss:$0 sm:$0xff]  ;;  %s1492_s6 = smov [#allocation11]  }
 0x17c   :  { %s931_s28 = sshll.u32 %s1492_s6, 4  ;;  %s932_s28 = int_to_ptr.vmem [resolvable:$true] %s931_s28 }
 0x17d   :  { %v631_v48 = vadd.f32 %v630_v46, %v602_v45  ;;  %v645_v57 = vmax.f32 %v571_v52, 0.0 }
 0x17f   :  { %v648_v50 = vmax.f32 %v631_v48, 0.0 }
 0x180   :  { %v543_v51 = vpop.f32.mrf.mxu2 }
 0x181   :  { %v544_v53 = vadd.f32 %v543_v51, %v1580_v37  ;;  %v656_v54 = vpack.c.bf16 %v648_v50, %v646_v49  ;;  %v572_v55 = vpop.f32.mrf.mxu3 }
 0x183   :  { %v573_v56 = vadd.f32 %v572_v55, %v544_v53  ;;  %841 = vmatmul.bf16.gmra.mxu3 %v656_v54 }
 0x185   :  { %v647_v58 = vmax.f32 %v573_v56, 0.0 }
 0x187   :  { %v655_v59 = vpack.c.bf16 %v647_v58, %v645_v57 }
 0x189   :  { %812 = vmatmul.bf16.gmra.mxu2 %v655_v59 }
 0x1d6   :  { %v827_v60 = vpop.f32.mrf.mxu3 }
 0x1dc   :  { %v798_v61 = vpop.f32.mrf.mxu2 }
 0x1dd   :  { %v799_v62 = vadd.f32 %v1298_v33, %v798_v61 }
 0x1de   :  { %v829_v63 = vpop.f32.mrf.mxu3 }
 0x1df   :  { %v828_v0 = vadd.f32 %v827_v60, %v799_v62 }
 0x1e1   :  { %847 = vmax.xlane.f32.xlu0 %v828_v0 }
 0x1e4   :  { %v800_v1 = vpop.f32.mrf.mxu2 }
 0x1e5   :  { %v801_v37 = vadd.f32 %v1298_v33, %v800_v1 }
 0x1e6   :  { %v832_v2 = vpop.f32.mrf.mxu3 }
 0x1e7   :  { %v830_v3 = vadd.f32 %v829_v63, %v801_v37 }
 0x1e9   :  { %849 = vmax.xlane.f32.xlu0 %v830_v3 }
 0x1ec   :  { %v803_v4 = vpop.f32.mrf.mxu2 }
 0x1ed   :  { %v804_v5 = vadd.f32 %v1298_v33, %v803_v4 }
 0x1ee   :  { %v834_v6 = vpop.f32.mrf.mxu3 }
 0x1ef   :  { %v833_v7 = vadd.f32 %v832_v2, %v804_v5 }
 0x1f1   :  { %851 = vmax.xlane.f32.xlu1 %v833_v7 }
 0x1f4   :  { %v805_v8 = vpop.f32.mrf.mxu2 }
 0x1f5   :  { %v806_v9 = vadd.f32 %v1298_v33, %v805_v8 }
 0x1f6   :  { %v837_v11 = vpop.f32.mrf.mxu3 }
 0x1f7   :  { %v835_v10 = vadd.f32 %v834_v6, %v806_v9 }
 0x1f9   :  { %853 = vmax.xlane.f32.xlu1 %v835_v10 }
 0x1fc   :  { %v808_v12 = vpop.f32.mrf.mxu2 }
 0x1fd   :  { %v809_v13 = vadd.f32 %v1298_v33, %v808_v12 }
 0x1fe   :  { %v839_v15 = vpop.f32.mrf.mxu3 }
 0x1ff   :  { %v838_v14 = vadd.f32 %v837_v11, %v809_v13 }
 0x201   :  { %855 = vmax.xlane.f32.xlu2 %v838_v14 }
 0x204   :  { %v810_v16 = vpop.f32.mrf.mxu2 }
 0x205   :  { %v811_v17 = vadd.f32 %v1298_v33, %v810_v16 }
 0x206   :  { %v842_v19 = vpop.f32.mrf.mxu3 }
 0x207   :  { %v840_v18 = vadd.f32 %v839_v15, %v811_v17 }
 0x209   :  { %857 = vmax.xlane.f32.xlu2 %v840_v18 }
 0x20c   :  { %v813_v20 = vpop.f32.mrf.mxu2 }
 0x20d   :  { %v814_v21 = vadd.f32 %v1298_v33, %v813_v20 }
 0x20e   :  { %v844_v27 = vpop.f32.mrf.mxu3 }
 0x20f   :  { %v843_v22 = vadd.f32 %v842_v19, %v814_v21 }
 0x211   :  { %859 = vmax.xlane.f32.xlu0 %v843_v22 }
 0x214   :  { %v815_v25 = vpop.f32.mrf.mxu2 }
 0x215   :  { %v816_v26 = vadd.f32 %v1298_v33, %v815_v25 }
 0x217   :  { %v845_v28 = vadd.f32 %v844_v27, %v816_v26 }
 0x219   :  { %861 = vmax.xlane.f32.xlu1 %v845_v28 }
 0x254   :  { %v848_v29 = vpop.xlane.xlu0 %847 }
 0x255   :  { %v863_v30 = vsub.f32 %v828_v0, %v848_v29 }
 0x257   :  { %v871_v23 = vmul.f32 1.442695, %v863_v30 }
 0x259   :  { %1299 = vpow2.f32 %v871_v23 }
 0x25c   :  { %v850_v31 = vpop.xlane.xlu0 %849 }
 0x25d   :  { %v864_v24 = vsub.f32 %v830_v3, %v850_v31 }
 0x25f   :  { %v1300_v32 = vpop.eup %1299  ;;  %v873_v34 = vmul.f32 1.442695, %v864_v24 }
 0x260   :  { %887 = vadd.xlane.f32.xlu2 %v1300_v32 }
 0x261   :  { %1301 = vpow2.f32 %v873_v34 }
 0x264   :  { %v852_v35 = vpop.xlane.xlu1 %851 }
 0x265   :  { %v865_v36 = vsub.f32 %v833_v7, %v852_v35 }
 0x267   :  { %v1302_v38 = vpop.eup %1301  ;;  %v875_v39 = vmul.f32 1.442695, %v865_v36 }
 0x268   :  { %889 = vadd.xlane.f32.xlu0 %v1302_v38 }
 0x269   :  { %1303 = vpow2.f32 %v875_v39 }
 0x26c   :  { %v854_v40 = vpop.xlane.xlu1 %853 }
 0x26d   :  { %v866_v41 = vsub.f32 %v835_v10, %v854_v40 }
 0x26f   :  { %v1304_v42 = vpop.eup %1303  ;;  %v877_v43 = vmul.f32 1.442695, %v866_v41 }
 0x270   :  { %891 = vadd.xlane.f32.xlu1 %v1304_v42 }
 0x271   :  { %1305 = vpow2.f32 %v877_v43 }
 0x274   :  { %v856_v44 = vpop.xlane.xlu2 %855 }
 0x275   :  { %v867_v45 = vsub.f32 %v838_v14, %v856_v44 }
 0x277   :  { %v1306_v46 = vpop.eup %1305  ;;  %v879_v47 = vmul.f32 1.442695, %v867_v45 }
 0x278   :  { %893 = vadd.xlane.f32.xlu2 %v1306_v46 }
 0x279   :  { %1307 = vpow2.f32 %v879_v47 }
 0x27c   :  { %v858_v48 = vpop.xlane.xlu2 %857 }
 0x27d   :  { %v868_v49 = vsub.f32 %v840_v18, %v858_v48 }
 0x27f   :  { %v1308_v50 = vpop.eup %1307  ;;  %v881_v51 = vmul.f32 1.442695, %v868_v49 }
 0x280   :  { %895 = vadd.xlane.f32.xlu0 %v1308_v50 }
 0x281   :  { %1309 = vpow2.f32 %v881_v51 }
 0x284   :  { %v860_v52 = vpop.xlane.xlu0 %859 }
 0x285   :  { %v869_v53 = vsub.f32 %v843_v22, %v860_v52 }
 0x287   :  { %v1310_v54 = vpop.eup %1309  ;;  %v883_v55 = vmul.f32 1.442695, %v869_v53 }
 0x288   :  { %897 = vadd.xlane.f32.xlu1 %v1310_v54 }
 0x289   :  { %1311 = vpow2.f32 %v883_v55 }
 0x28c   :  { %v862_v56 = vpop.xlane.xlu1 %861 }
 0x28d   :  { %v870_v57 = vsub.f32 %v845_v28, %v862_v56 }
 0x28f   :  { %v1312_v58 = vpop.eup %1311  ;;  %v885_v59 = vmul.f32 1.442695, %v870_v57 }
 0x290   :  { %899 = vadd.xlane.f32.xlu2 %v1312_v58 }
 0x291   :  { %1313 = vpow2.f32 %v885_v59 }
 0x297   :  { %v1314_v60 = vpop.eup %1313 }
 0x298   :  { %901 = vadd.xlane.f32.xlu0 %v1314_v60 }
 0x2d3   :  { %v888_v33 = vpop.xlane.xlu2 %887 }
 0x2d4   :  { %1315 = vrcp.f32 %v888_v33 }
 0x2da   :  { %v1316_v61 = vpop.eup %1315 }
 0x2db   :  { %v911_v62 = vmul.f32 %v1316_v61, %v1300_v32  ;;  %v890_v63 = vpop.xlane.xlu0 %889 }
 0x2dc   :  { %1317 = vrcp.f32 %v890_v63 }
 0x2dd   :  { %919 = vst [vmem:[#allocation11] sm:$0xff] %v911_v62 }
 0x2e2   :  { %v1318_v0 = vpop.eup %1317 }
 0x2e3   :  { %v912_v1 = vmul.f32 %v1318_v0, %v1302_v38  ;;  %v892_v37 = vpop.xlane.xlu1 %891 }
 0x2e4   :  { %1319 = vrcp.f32 %v892_v37 }
 0x2e5   :  { %920 = vst [vmem:[#allocation11 + $0x8] sm:$0xff] %v912_v1 }
 0x2ea   :  { %v1320_v2 = vpop.eup %1319 }
 0x2eb   :  { %v913_v3 = vmul.f32 %v1320_v2, %v1304_v42  ;;  %v894_v4 = vpop.xlane.xlu2 %893 }
 0x2ec   :  { %1321 = vrcp.f32 %v894_v4 }
 0x2ed   :  { %921 = vst [vmem:[#allocation11 + $0x10] sm:$0xff] %v913_v3 }
 0x2f2   :  { %v1322_v5 = vpop.eup %1321 }
 0x2f3   :  { %v914_v6 = vmul.f32 %v1322_v5, %v1306_v46  ;;  %v896_v7 = vpop.xlane.xlu0 %895 }
 0x2f4   :  { %1323 = vrcp.f32 %v896_v7 }
 0x2f5   :  { %922 = vst [vmem:[#allocation11 + $0x18] sm:$0xff] %v914_v6 }
 0x2fa   :  { %v1324_v8 = vpop.eup %1323 }
 0x2fb   :  { %v915_v9 = vmul.f32 %v1324_v8, %v1308_v50  ;;  %v898_v10 = vpop.xlane.xlu1 %897 }
 0x2fc   :  { %1325 = vrcp.f32 %v898_v10 }
 0x2fd   :  { %923 = vst [vmem:[#allocation11 + $0x20] sm:$0xff] %v915_v9 }
 0x302   :  { %v1326_v11 = vpop.eup %1325 }
 0x303   :  { %v916_v12 = vmul.f32 %v1326_v11, %v1310_v54  ;;  %v900_v13 = vpop.xlane.xlu2 %899 }
 0x304   :  { %1327 = vrcp.f32 %v900_v13 }
 0x305   :  { %924 = vst [vmem:[#allocation11 + $0x28] sm:$0xff] %v916_v12 }
 0x30a   :  { %v1328_v14 = vpop.eup %1327 }
 0x30b   :  { %v917_v15 = vmul.f32 %v1328_v14, %v1312_v58  ;;  %v902_v16 = vpop.xlane.xlu0 %901 }
 0x30c   :  { %1329 = vrcp.f32 %v902_v16 }
 0x30d   :  { %925 = vst [vmem:[#allocation11 + $0x30] sm:$0xff] %v917_v15 }
 0x312   :  { %v1330_v17 = vpop.eup %1329 }
 0x313   :  { %v918_v18 = vmul.f32 %v1330_v17, %v1314_v60 }
 0x315   :  { %926 = vst [vmem:[#allocation11 + $0x38] sm:$0xff] %v918_v18 }
 0x316   :  { %939 = dma.vmem_to_hbm [thread:$0]  %s932_s28, 1024, %s934_s8, [#allocation4], %s1484_s9, %s1484_s9, %s1485_s10  }
 0x317   :  { %1481 = dma.done.wait [#allocation4], 1024  }
 0x318   :  { %1482 = vsyncadd [#allocation4], 4294966272 }
 0x319   :  { %944 = vsyncpa [#allocation3], 1 }
 0x31a   :  { %945 = vsyncpa [#allocation6], 1 }
 0x31b   :  { %946 = vsyncpa [#allocation9], 1 }
 0x31c   :  { %947 = vsyncpa [#allocation4], 1 }

</bundles_post_ra>
